<compile_context>
chip_gen: v6e
topology: v6e:2x2x1
jax: 0.10.0
libtpu: 0.0.40
codegen_flags: <defaults>
</compile_context>

<pallas_src>
from functools import partial
import math

import numpy as np
import jax
import jax.numpy as jnp
from jax import lax
from jax.experimental import pallas as pl
from jax.experimental.pallas import tpu as pltpu


def _tcn_bn_kernel(x_ref, w_ref, shift_ref, o_ref, *, K, C_in, V, dilation, tc):
    """One (batch element, output-time chunk) per grid step.

    x_ref:     (1, 1, C_in, win*V)  per-chunk input window (compute dtype), win = tc + (K-1)*d
    w_ref:     (K, C_out, C_in)     per-tap conv weights with BN scale folded in (compute dtype)
    shift_ref: (C_out, 1)           folded conv-bias + BN shift (f32)
    o_ref:     (1, C_out, tc*V)     flattened NCHW output chunk (lane-dense)
    """
    lw = tc * V
    acc = None
    # K per-tap MXU matmuls accumulated in f32.  All offsets are static, and the taps +
    # matmuls sit in one straight-line unrolled region so the (inherent, V=25)
    # sub-128-lane shifts co-issue on the XLU underneath the vmatmuls.
    # NOTE: for large-C_out / small-C_in MXU-bound layers on v6e/v7x one could group
    # 2-4 taps per matmul to better fill the 256-deep MXU; per-tap keeps the kernel
    # free of im2col store traffic, which dominates at small/medium channel counts.
    for k in range(K):
        xk = x_ref[0, 0, :, pl.ds(k * dilation * V, lw)]          # (C_in, lw)
        wk = w_ref[k]                                             # (C_out, C_in)
        p = jnp.dot(wk, xk, preferred_element_type=jnp.float32)   # (C_out, lw) f32
        acc = p if acc is None else acc + p
    # Fused conv-bias + BN shift, f32 epilogue, single unmasked lane-dense store.
    o_ref[0, :, :] = (acc + shift_ref[...]).astype(o_ref.dtype)


def unit_tcn_dilated_forward(x, keep_prob, A, params, *, kernel_size=9, stride=1,
                             dilation=1, compute_dtype=jnp.bfloat16, t_chunk=128):
    """x: (N, C_in, T, V) float (PyTorch NCHW).  Returns (N, C_out, T_out, V) in x.dtype."""
    # DropBlock_Ske / DropBlockT_1d are identity at keep_prob == 1 (inference path).
    # TODO(synk): stochastic training-path DropBlock masking (keep_prob < 1) not implemented.
    assert float(keep_prob) == 1.0, "only the inference path (keep_prob == 1) is supported"
    del A
    assert stride == 1  # TODO(synk): strided temporal conv not implemented in the kernel
    assert t_chunk % 128 == 0, "t_chunk must be a multiple of 128 (lane-aligned stores with V=25)"

    w4 = params["w"]                                   # (C_out, C_in, K, 1) Conv2d layout
    b, gamma, beta = params["b"], params["gamma"], params["beta"]
    r_mean, r_var, eps = params["running_mean"], params["running_var"], params["eps"]

    N, C_in, T, V = x.shape
    C_out, _, K, _ = w4.shape
    assert K == kernel_size
    pad = (K + (K - 1) * (dilation - 1) - 1) // 2
    T_out = T + 2 * pad - dilation * (K - 1)           # stride == 1
    assert T_out > 0

    # Fold conv bias + inference (eval-mode) BatchNorm:  y = (scale*W) (*) x + shift.
    # TODO(synk): training-mode (batch-statistics) BatchNorm not supported.
    scale = gamma / jnp.sqrt(r_var + eps)
    shift = ((b - r_mean) * scale + beta).reshape(C_out, 1).astype(jnp.float32)
    # Per-tap weight layout (K, C_out, C_in) with BN scale folded in.
    w_taps = (jnp.transpose(w4[..., 0], (2, 0, 1)) * scale[None, :, None]).astype(compute_dtype)

    # Output-time chunking: one grid step per (batch element, output chunk).
    tc = t_chunk if T_out > t_chunk else T_out         # tc*V multiple of 128, or full T_out*V
    n_chunks = -(-T_out // tc)
    win = tc + dilation * (K - 1)                      # input time steps needed per chunk

    # Single host-side prep pass over x (XLA fuses cast + pad + slicing): cast to the
    # compute dtype once, add the conv zero padding, extract overlapping chunk windows.
    pad_r = n_chunks * tc + dilation * (K - 1) - pad - T          # >= pad >= 0
    xp = jnp.pad(x.astype(compute_dtype), ((0, 0), (0, 0), (pad, pad_r), (0, 0)))
    xw = jnp.stack([xp[:, :, c * tc: c * tc + win, :] for c in range(n_chunks)], axis=1)
    xw = xw.reshape(N, n_chunks, C_in, win * V)        # lane-dense merged (T, V) axis

    kernel = partial(_tcn_bn_kernel, K=K, C_in=C_in, V=V, dilation=dilation, tc=tc)

    # VMEM budget from the actual (double-buffered) block sizes, clamped for headroom.
    csize = jnp.dtype(compute_dtype).itemsize
    need = (2 * C_in * win * V * csize                  # input window blocks (x2 buffers)
            + 2 * C_out * tc * V * x.dtype.itemsize     # output chunk blocks (x2 buffers)
            + K * C_out * C_in * csize + C_out * 4      # weights + shift (resident)
            + 2 * C_out * tc * V * 4                    # f32 accumulator / MXU partials
            + (4 << 20))                                # slack
    vmem_limit = int(min(max(need, 32 << 20), 100 << 20))

    out_flat = pl.pallas_call(
        kernel,
        out_shape=jax.ShapeDtypeStruct((N, C_out, T_out * V), x.dtype),
        grid_spec=pltpu.PrefetchScalarGridSpec(
            num_scalar_prefetch=0,
            grid=(N, n_chunks),
            in_specs=[
                pl.BlockSpec((1, 1, C_in, win * V), lambda n, c: (n, c, 0, 0)),
                pl.BlockSpec((K, C_out, C_in), lambda n, c: (0, 0, 0)),
                pl.BlockSpec((C_out, 1), lambda n, c: (0, 0)),
            ],
            out_specs=pl.BlockSpec((1, C_out, tc * V), lambda n, c: (n, 0, c)),
        ),
        compiler_params=pltpu.CompilerParams(
            dimension_semantics=("parallel", "parallel"),
            vmem_limit_bytes=vmem_limit,
        ),
    )(xw, w_taps, shift)

    # DropBlock_Ske / DropBlockT_1d are identity at keep_prob == 1.
    return out_flat.reshape(N, C_out, T_out, V)        # free reshape; already NCHW


def _reference_forward(x, params, *, kernel_size=9, dilation=1):
    """Pure-JAX reference (lax conv + inference BN) for correctness checking."""
    w = params["w"]                                    # (C_out, C_in, K, 1)
    pad = (kernel_size + (kernel_size - 1) * (dilation - 1) - 1) // 2
    y = lax.conv_general_dilated(
        x, w, window_strides=(1, 1),
        padding=((pad, pad), (0, 0)),
        rhs_dilation=(dilation, 1),
        dimension_numbers=("NCHW", "OIHW", "NCHW"),
        precision=lax.Precision.HIGHEST)
    y = y + params["b"][None, :, None, None]
    scale = params["gamma"] / jnp.sqrt(params["running_var"] + params["eps"])
    y = (y - params["running_mean"][None, :, None, None]) * scale[None, :, None, None] \
        + params["beta"][None, :, None, None]
    return y


def _make_inputs(key, N, C_in, C_out, T, V, K):
    kx, kw, kb, kg, kbe, km, kv, ka = jax.random.split(key, 8)
    x = jax.random.normal(kx, (N, C_in, T, V), dtype=jnp.float32)
    A = jax.random.uniform(ka, (V, V), dtype=jnp.float32)     # adjacency (unused at keep_prob=1)
    fan = C_in * K
    params = {
        "w": jax.random.normal(kw, (C_out, C_in, K, 1), jnp.float32) * math.sqrt(2.0 / fan),
        "b": 0.1 * jax.random.normal(kb, (C_out,), jnp.float32),
        "gamma": jax.random.uniform(kg, (C_out,), jnp.float32, minval=0.5, maxval=1.5),
        "beta": 0.1 * jax.random.normal(kbe, (C_out,), jnp.float32),
        "running_mean": 0.1 * jax.random.normal(km, (C_out,), jnp.float32),
        "running_var": jax.random.uniform(kv, (C_out,), jnp.float32, minval=0.5, maxval=1.5),
        "eps": jnp.float32(1e-5),
    }
    return x, A, params


if __name__ == "__main__":
    # Small deterministic setup consistent with the module: x is (N, C_in, T, V), V = num_point = 25.
    N, C_in, C_out, V = 2, 4, 8, 25
    kernel_size, stride, dilation = 9, 1, 2
    keep_prob = 1.0
    key = jax.random.PRNGKey(0)

    # --- Test 1: small T (single-chunk path) -------------------------------------------
    T = 16
    x, A, params = _make_inputs(key, N, C_in, C_out, T, V, kernel_size)
    ref = _reference_forward(x, params, kernel_size=kernel_size, dilation=dilation)

    # f32 matmul-input path (tight check).
    out = unit_tcn_dilated_forward(x, keep_prob, A, params,
                                   kernel_size=kernel_size, stride=stride,
                                   dilation=dilation, compute_dtype=jnp.float32)
    out = jax.block_until_ready(out)
    np.testing.assert_allclose(np.asarray(out), np.asarray(ref), rtol=5e-4, atol=5e-4)

    # bf16 matmul-input path (default; f32 accumulation + f32 epilogue), loose check.
    out_bf16 = unit_tcn_dilated_forward(x, keep_prob, A, params,
                                        kernel_size=kernel_size, stride=stride,
                                        dilation=dilation, compute_dtype=jnp.bfloat16)
    out_bf16 = jax.block_until_ready(out_bf16)
    np.testing.assert_allclose(np.asarray(out_bf16), np.asarray(ref), rtol=1e-1, atol=1e-1)

    # --- Test 2: longer T (multi-chunk grid path, ragged last chunk) --------------------
    T2 = 150
    x2, A2, params2 = _make_inputs(jax.random.PRNGKey(1), N, C_in, C_out, T2, V, kernel_size)
    ref2 = _reference_forward(x2, params2, kernel_size=kernel_size, dilation=dilation)
    out2 = unit_tcn_dilated_forward(x2, keep_prob, A2, params2,
                                    kernel_size=kernel_size, stride=stride,
                                    dilation=dilation, compute_dtype=jnp.float32)
    out2 = jax.block_until_ready(out2)
    np.testing.assert_allclose(np.asarray(out2), np.asarray(ref2), rtol=5e-4, atol=5e-4)

    print("KERNEL_OK")
</pallas_src>

<mosaic_0001>
module attributes {stable_mosaic.version = 11 : i64} {
  func.func @_tcn_bn_kernel(%arg0: i32, %arg1: i32, %arg2: memref<1x1x4x800xf32, #tpu.memory_space<vmem>>, %arg3: memref<9x8x4xf32, #tpu.memory_space<vmem>>, %arg4: memref<8x1xf32, #tpu.memory_space<vmem>>, %arg5: memref<1x8x400xf32, #tpu.memory_space<vmem>>) attributes {dimension_semantics = [#tpu.dimension_semantics<parallel>, #tpu.dimension_semantics<parallel>], iteration_bounds = array<i64: 2, 1>, scalar_prefetch = 0 : i64, scratch_operands = 0 : i64, tpu.core_type = #tpu.core_type<tc>, window_params = [{transform_indices = @transform_0, window_bounds = array<i64: 1, 1, 4, 800>}, {pipeline_mode = #tpu.pipeline_mode<synchronous>, transform_indices = @transform_1, window_bounds = array<i64: 9, 8, 4>}, {pipeline_mode = #tpu.pipeline_mode<synchronous>, transform_indices = @transform_2, window_bounds = array<i64: 8, 1>}, {transform_indices = @transform_3, window_bounds = array<i64: 1, 8, 400>}]} {
    %c0 = arith.constant 0 : index
    %c0_0 = arith.constant 0 : index
    %c0_1 = arith.constant 0 : index
    %c0_2 = arith.constant 0 : index
    %0 = vector.load %arg2[%c0, %c0_0, %c0_1, %c0_2] : memref<1x1x4x800xf32, #tpu.memory_space<vmem>>, vector<1x1x4x400xf32>
    %1 = vector.shape_cast %0 : vector<1x1x4x400xf32> to vector<4x400xf32>
    %c0_3 = arith.constant 0 : index
    %c0_4 = arith.constant 0 : index
    %c0_5 = arith.constant 0 : index
    %2 = vector.load %arg3[%c0_3, %c0_4, %c0_5] : memref<9x8x4xf32, #tpu.memory_space<vmem>>, vector<1x8x4xf32>
    %3 = vector.shape_cast %2 : vector<1x8x4xf32> to vector<8x4xf32>
    %cst = arith.constant dense<0.000000e+00> : vector<8x400xf32>
    %4 = tpu.matmul %3, %1, %cst {dimension_numbers = #tpu.dot_dimension_numbers<[1], [0], [0], [1], [0, 0, 1, 1], [], []>} : vector<8x4xf32>, vector<4x400xf32>, vector<8x400xf32> -> vector<8x400xf32>
    %c0_6 = arith.constant 0 : index
    %c0_7 = arith.constant 0 : index
    %c0_8 = arith.constant 0 : index
    %c50 = arith.constant 50 : index
    %5 = vector.load %arg2[%c0_6, %c0_7, %c0_8, %c50] : memref<1x1x4x800xf32, #tpu.memory_space<vmem>>, vector<1x1x4x400xf32>
    %6 = vector.shape_cast %5 : vector<1x1x4x400xf32> to vector<4x400xf32>
    %c1 = arith.constant 1 : index
    %c0_9 = arith.constant 0 : index
    %c0_10 = arith.constant 0 : index
    %7 = vector.load %arg3[%c1, %c0_9, %c0_10] : memref<9x8x4xf32, #tpu.memory_space<vmem>>, vector<1x8x4xf32>
    %8 = vector.shape_cast %7 : vector<1x8x4xf32> to vector<8x4xf32>
    %cst_11 = arith.constant dense<0.000000e+00> : vector<8x400xf32>
    %9 = tpu.matmul %8, %6, %cst_11 {dimension_numbers = #tpu.dot_dimension_numbers<[1], [0], [0], [1], [0, 0, 1, 1], [], []>} : vector<8x4xf32>, vector<4x400xf32>, vector<8x400xf32> -> vector<8x400xf32>
    %10 = arith.addf %4, %9 : vector<8x400xf32>
    %c0_12 = arith.constant 0 : index
    %c0_13 = arith.constant 0 : index
    %c0_14 = arith.constant 0 : index
    %c100 = arith.constant 100 : index
    %11 = vector.load %arg2[%c0_12, %c0_13, %c0_14, %c100] : memref<1x1x4x800xf32, #tpu.memory_space<vmem>>, vector<1x1x4x400xf32>
    %12 = vector.shape_cast %11 : vector<1x1x4x400xf32> to vector<4x400xf32>
    %c2 = arith.constant 2 : index
    %c0_15 = arith.constant 0 : index
    %c0_16 = arith.constant 0 : index
    %13 = vector.load %arg3[%c2, %c0_15, %c0_16] : memref<9x8x4xf32, #tpu.memory_space<vmem>>, vector<1x8x4xf32>
    %14 = vector.shape_cast %13 : vector<1x8x4xf32> to vector<8x4xf32>
    %cst_17 = arith.constant dense<0.000000e+00> : vector<8x400xf32>
    %15 = tpu.matmul %14, %12, %cst_17 {dimension_numbers = #tpu.dot_dimension_numbers<[1], [0], [0], [1], [0, 0, 1, 1], [], []>} : vector<8x4xf32>, vector<4x400xf32>, vector<8x400xf32> -> vector<8x400xf32>
    %16 = arith.addf %10, %15 : vector<8x400xf32>
    %c0_18 = arith.constant 0 : index
    %c0_19 = arith.constant 0 : index
    %c0_20 = arith.constant 0 : index
    %c150 = arith.constant 150 : index
    %17 = vector.load %arg2[%c0_18, %c0_19, %c0_20, %c150] : memref<1x1x4x800xf32, #tpu.memory_space<vmem>>, vector<1x1x4x400xf32>
    %18 = vector.shape_cast %17 : vector<1x1x4x400xf32> to vector<4x400xf32>
    %c3 = arith.constant 3 : index
    %c0_21 = arith.constant 0 : index
    %c0_22 = arith.constant 0 : index
    %19 = vector.load %arg3[%c3, %c0_21, %c0_22] : memref<9x8x4xf32, #tpu.memory_space<vmem>>, vector<1x8x4xf32>
    %20 = vector.shape_cast %19 : vector<1x8x4xf32> to vector<8x4xf32>
    %cst_23 = arith.constant dense<0.000000e+00> : vector<8x400xf32>
    %21 = tpu.matmul %20, %18, %cst_23 {dimension_numbers = #tpu.dot_dimension_numbers<[1], [0], [0], [1], [0, 0, 1, 1], [], []>} : vector<8x4xf32>, vector<4x400xf32>, vector<8x400xf32> -> vector<8x400xf32>
    %22 = arith.addf %16, %21 : vector<8x400xf32>
    %c0_24 = arith.constant 0 : index
    %c0_25 = arith.constant 0 : index
    %c0_26 = arith.constant 0 : index
    %c200 = arith.constant 200 : index
    %23 = vector.load %arg2[%c0_24, %c0_25, %c0_26, %c200] : memref<1x1x4x800xf32, #tpu.memory_space<vmem>>, vector<1x1x4x400xf32>
    %24 = vector.shape_cast %23 : vector<1x1x4x400xf32> to vector<4x400xf32>
    %c4 = arith.constant 4 : index
    %c0_27 = arith.constant 0 : index
    %c0_28 = arith.constant 0 : index
    %25 = vector.load %arg3[%c4, %c0_27, %c0_28] : memref<9x8x4xf32, #tpu.memory_space<vmem>>, vector<1x8x4xf32>
    %26 = vector.shape_cast %25 : vector<1x8x4xf32> to vector<8x4xf32>
    %cst_29 = arith.constant dense<0.000000e+00> : vector<8x400xf32>
    %27 = tpu.matmul %26, %24, %cst_29 {dimension_numbers = #tpu.dot_dimension_numbers<[1], [0], [0], [1], [0, 0, 1, 1], [], []>} : vector<8x4xf32>, vector<4x400xf32>, vector<8x400xf32> -> vector<8x400xf32>
    %28 = arith.addf %22, %27 : vector<8x400xf32>
    %c0_30 = arith.constant 0 : index
    %c0_31 = arith.constant 0 : index
    %c0_32 = arith.constant 0 : index
    %c250 = arith.constant 250 : index
    %29 = vector.load %arg2[%c0_30, %c0_31, %c0_32, %c250] : memref<1x1x4x800xf32, #tpu.memory_space<vmem>>, vector<1x1x4x400xf32>
    %30 = vector.shape_cast %29 : vector<1x1x4x400xf32> to vector<4x400xf32>
    %c5 = arith.constant 5 : index
    %c0_33 = arith.constant 0 : index
    %c0_34 = arith.constant 0 : index
    %31 = vector.load %arg3[%c5, %c0_33, %c0_34] : memref<9x8x4xf32, #tpu.memory_space<vmem>>, vector<1x8x4xf32>
    %32 = vector.shape_cast %31 : vector<1x8x4xf32> to vector<8x4xf32>
    %cst_35 = arith.constant dense<0.000000e+00> : vector<8x400xf32>
    %33 = tpu.matmul %32, %30, %cst_35 {dimension_numbers = #tpu.dot_dimension_numbers<[1], [0], [0], [1], [0, 0, 1, 1], [], []>} : vector<8x4xf32>, vector<4x400xf32>, vector<8x400xf32> -> vector<8x400xf32>
    %34 = arith.addf %28, %33 : vector<8x400xf32>
    %c0_36 = arith.constant 0 : index
    %c0_37 = arith.constant 0 : index
    %c0_38 = arith.constant 0 : index
    %c300 = arith.constant 300 : index
    %35 = vector.load %arg2[%c0_36, %c0_37, %c0_38, %c300] : memref<1x1x4x800xf32, #tpu.memory_space<vmem>>, vector<1x1x4x400xf32>
    %36 = vector.shape_cast %35 : vector<1x1x4x400xf32> to vector<4x400xf32>
    %c6 = arith.constant 6 : index
    %c0_39 = arith.constant 0 : index
    %c0_40 = arith.constant 0 : index
    %37 = vector.load %arg3[%c6, %c0_39, %c0_40] : memref<9x8x4xf32, #tpu.memory_space<vmem>>, vector<1x8x4xf32>
    %38 = vector.shape_cast %37 : vector<1x8x4xf32> to vector<8x4xf32>
    %cst_41 = arith.constant dense<0.000000e+00> : vector<8x400xf32>
    %39 = tpu.matmul %38, %36, %cst_41 {dimension_numbers = #tpu.dot_dimension_numbers<[1], [0], [0], [1], [0, 0, 1, 1], [], []>} : vector<8x4xf32>, vector<4x400xf32>, vector<8x400xf32> -> vector<8x400xf32>
    %40 = arith.addf %34, %39 : vector<8x400xf32>
    %c0_42 = arith.constant 0 : index
    %c0_43 = arith.constant 0 : index
    %c0_44 = arith.constant 0 : index
    %c350 = arith.constant 350 : index
    %41 = vector.load %arg2[%c0_42, %c0_43, %c0_44, %c350] : memref<1x1x4x800xf32, #tpu.memory_space<vmem>>, vector<1x1x4x400xf32>
    %42 = vector.shape_cast %41 : vector<1x1x4x400xf32> to vector<4x400xf32>
    %c7 = arith.constant 7 : index
    %c0_45 = arith.constant 0 : index
    %c0_46 = arith.constant 0 : index
    %43 = vector.load %arg3[%c7, %c0_45, %c0_46] : memref<9x8x4xf32, #tpu.memory_space<vmem>>, vector<1x8x4xf32>
    %44 = vector.shape_cast %43 : vector<1x8x4xf32> to vector<8x4xf32>
    %cst_47 = arith.constant dense<0.000000e+00> : vector<8x400xf32>
    %45 = tpu.matmul %44, %42, %cst_47 {dimension_numbers = #tpu.dot_dimension_numbers<[1], [0], [0], [1], [0, 0, 1, 1], [], []>} : vector<8x4xf32>, vector<4x400xf32>, vector<8x400xf32> -> vector<8x400xf32>
    %46 = arith.addf %40, %45 : vector<8x400xf32>
    %c0_48 = arith.constant 0 : index
    %c0_49 = arith.constant 0 : index
    %c0_50 = arith.constant 0 : index
    %c400 = arith.constant 400 : index
    %47 = vector.load %arg2[%c0_48, %c0_49, %c0_50, %c400] : memref<1x1x4x800xf32, #tpu.memory_space<vmem>>, vector<1x1x4x400xf32>
    %48 = vector.shape_cast %47 : vector<1x1x4x400xf32> to vector<4x400xf32>
    %c8 = arith.constant 8 : index
    %c0_51 = arith.constant 0 : index
    %c0_52 = arith.constant 0 : index
    %49 = vector.load %arg3[%c8, %c0_51, %c0_52] : memref<9x8x4xf32, #tpu.memory_space<vmem>>, vector<1x8x4xf32>
    %50 = vector.shape_cast %49 : vector<1x8x4xf32> to vector<8x4xf32>
    %cst_53 = arith.constant dense<0.000000e+00> : vector<8x400xf32>
    %51 = tpu.matmul %50, %48, %cst_53 {dimension_numbers = #tpu.dot_dimension_numbers<[1], [0], [0], [1], [0, 0, 1, 1], [], []>} : vector<8x4xf32>, vector<4x400xf32>, vector<8x400xf32> -> vector<8x400xf32>
    %52 = arith.addf %46, %51 : vector<8x400xf32>
    %c0_54 = arith.constant 0 : index
    %c0_55 = arith.constant 0 : index
    %53 = vector.load %arg4[%c0_54, %c0_55] : memref<8x1xf32, #tpu.memory_space<vmem>>, vector<8x1xf32>
    %54 = vector.broadcast %53 : vector<8x1xf32> to vector<8x400xf32>
    %55 = arith.addf %52, %54 : vector<8x400xf32>
    %c0_56 = arith.constant 0 : index
    %c0_57 = arith.constant 0 : index
    %c0_58 = arith.constant 0 : index
    %56 = vector.load %arg5[%c0_56, %c0_57, %c0_58] : memref<1x8x400xf32, #tpu.memory_space<vmem>>, vector<1x8x400xf32>
    %57 = vector.shape_cast %56 : vector<1x8x400xf32> to vector<8x400xf32>
    %58 = vector.shape_cast %55 : vector<8x400xf32> to vector<1x8x400xf32>
    tpu.vector_store %arg5[%c0_56, %c0_57, %c0_58], %58 {strides = array<i32>} : memref<1x8x400xf32, #tpu.memory_space<vmem>>, vector<1x8x400xf32>,
    return
  }
  func.func @transform_0(%arg0: i32, %arg1: i32) -> (i32, i32, i32, i32) {
    %c0_i32 = arith.constant 0 : i32
    %c0_i32_0 = arith.constant 0 : i32
    %c0_i32_1 = arith.constant 0 : i32
    return %arg0, %arg1, %c0_i32, %c0_i32_0 : i32, i32, i32, i32
  }
  func.func @transform_1(%arg0: i32, %arg1: i32) -> (i32, i32, i32) {
    %c0_i32 = arith.constant 0 : i32
    %c0_i32_0 = arith.constant 0 : i32
    %c0_i32_1 = arith.constant 0 : i32
    %c0_i32_2 = arith.constant 0 : i32
    return %c0_i32, %c0_i32_0, %c0_i32_1 : i32, i32, i32
  }
  func.func @transform_2(%arg0: i32, %arg1: i32) -> (i32, i32) {
    %c0_i32 = arith.constant 0 : i32
    %c0_i32_0 = arith.constant 0 : i32
    %c0_i32_1 = arith.constant 0 : i32
    return %c0_i32, %c0_i32_0 : i32, i32
  }
  func.func @transform_3(%arg0: i32, %arg1: i32) -> (i32, i32, i32) {
    %c0_i32 = arith.constant 0 : i32
    %c0_i32_0 = arith.constant 0 : i32
    return %arg0, %c0_i32, %arg1 : i32, i32, i32
  }
}

</mosaic_0001>

<bundles_post_ra>
// kernel: tpu_custom_call.1
= control target key start
LH: loop header
LB: loop body
LE: loop exit
PB: predicated region body
PF: predicated region fallthrough
CT: control target
= control target key end

     0   :  { %8 = vsyncpa [#allocation3], 0  ;;  %s2395_s0 = inlined_call_operand.vmem [shape: f32[2,1,4,800], index: 0, kind: input, shape index: {}]   ;;  %s2396_s1 = inlined_call_operand.vmem [shape: f32[9,8,4], index: 1, kind: input, shape index: {}]   ;;  %s2397_s2 = inlined_call_operand.vmem [shape: f32[8,1], index: 2, kind: input, shape index: {}]   ;;  %s2398_s3 = inlined_call_operand.hbm [shape: f32[2,8,400], index: 3, kind: output, shape index: {}]  }
   0x1   :  { %10 = vsyncpa [#allocation3 + $0x1], 0  ;;  %s2140_s12 = smov 0   ;;  %s2142_s13 = smov 0  }
   0x2   :  { %s2144_s14 = smov 0   ;;  %s2146_s15 = smov 0  }
   0x3   :  { %s2148_s16 = smov 0   ;;  %s2150_s17 = smov 0  }
   0x4 LB: > { %s1882_s18 = sadd.s32 4294967295, %s2107_s17   ;;  %s1883_s19 = sadd.s32 4294967294, %s2107_s17   ;;  %s2107_s17 = sphi %s2150_s17, %s16_s17   ;;  %s2103_s16 = sphi %s2148_s16, %s2405_s16   ;;  %s2099_s15 = sphi %s2146_s15, %s2404_s15   ;;  %s2095_s14 = sphi %s2144_s14, %s2403_s14   ;;  %s2091_s13 = sphi %s2142_s13, %s2402_s13   ;;  %s2087_s12 = sphi %s2140_s12, %s2401_s12  }
   0x5   : > { %s28_s20 = sadd.s32 1, %s2103_s16  ;;  %s107_s21 = sadd.s32 1, %s2095_s14 }
   0x6   : > { %p30_p0 = scmp.ge.s32.totalorder %s28_s20, 2  ;;  %p117_p1 = scmp.ne.s32.totalorder %s2095_s14, %s2091_s13 }
   0x7   : > { %p118_p2 = scmp.eq.s32.totalorder %s1882_s18, 1  ;;  %p123_p3 = scmp.ne.s32.totalorder %s2091_s13, %s2087_s12 }
   0x8   : > { %s2407_s20 = smov (%p30_p0, %s28_s20), 0  ;;  %p124_p5 = scmp.eq.s32.totalorder %s1883_s19, 1 }
   0x9   : > { %p2180_p4 = por %p118_p2, %p117_p1  ;;  %s102_s23 = ssub.s32 %s2103_s16, %s2407_s20 }
   0xa   : > { %p1886_p6 = scmp.ge.s32.totalorder %s2107_s17, 1  ;;  %p105_p7 = scmp.eq.s32.totalorder %s102_s23, 0 }
   0xb   : > { %p2187_p8 = por %p124_p5, %p123_p3  ;;  %p160_p9 = scmp.lt.s32.totalorder %s2107_s17, 3 }
   0xc   : > { %s2193_s25 = scalar_select %p105_p7, %s2095_s14, %s107_s21  }
   0xd   : > { %p161_p10 = pnand %p1886_p6, %p160_p9 }
   0xe   : > { %p188_p11 = scmp.lt.s32.totalorder (!%p161_p10), %s2099_s15, 1  ;;  %s2110_s4 = smov (!%p161_p10), 78  }
   0xf   : > { %164 = sbr.rel (%p161_p10) target bundleno = 419 (0x1a3), region = 32  ;;  %s2111_s5 = smov (!%p161_p10), 28  }
  0x10   : > { %s2112_s6 = smov (!%p161_p10), 106   ;;  %s2113_s7 = smov (!%p161_p10), 56  }
  0x11   : > { %s2114_s8 = smov (!%p161_p10), 6   ;;  %s2115_s9 = smov (!%p161_p10), 84  }
  0x12   : > { %s2116_s10 = smov (!%p161_p10), 34   ;;  %s2118_s11 = smov (!%p161_p10), 112  }
  0x13   : > { %s185_s23 = sand.u32 (!%p161_p10), 1, %s2091_s13   ;;  %s1956_s28 = sshll.u32 (!%p161_p10), %s2099_s15, 9 }
  0x14   : > { %s189_s26 = scalar_select %p188_p11, %s2099_s15, 1  ;;  %v2109_v0 = vmov 0.0   ;;  %v2117_v12 = vmov 0   ;;  %v1771_v15 = vld [vmem:[%s2397_s2] sm:$0xff]  ;;  %vm215_vm0 = vcmask 637952   ;;  %vm223_vm1 = vcmask 1043456  }
  0x15   : > { %296 = vmatprep.mubr.f32.mxu0 %v2109_v0  ;;  %367 = vmatprep.mubr.f32.mxu1 %v2109_v0  ;;  %v1889_v22 = vld [vmem:[%s2396_s1 + $0x8] sm:$0xff]  ;;  %vm219_vm2 = vcmask 31744   ;;  %vm543_vm3 = vcmask 228352   ;;  %v200_v27 = vld [vmem:[%s2396_s1] sm:$0xff]  ;;  %vm720_vm4 = vcmask 867328   ;;  %v1902_v32 = vld [vmem:[%s2396_s1 + $0x10] sm:$0xff] }
  0x16   : > { %s1957_s27 = smul.u32 28, %s189_s26  ;;  %2023 = vset.pattern.permute.xlu1 %v2117_v12  ;;  %2024 = vset.pattern.permute.xlu0 %v2117_v12  ;;  %v1909_v38 = vld [vmem:[%s2396_s1 + $0x18] sm:$0xff]  ;;  %vm897_vm5 = vcmask 457728   ;;  %v1916_v46 = vld [vmem:[%s2396_s1 + $0x20] sm:$0xff]  ;;  %vm1078_vm6 = vcmask 48128   ;;  %v1923_v56 = vld [vmem:[%s2396_s1 + $0x28] sm:$0xff] }
  0x17   : > { %vm1256_vm7 = vcmask 687104   ;;  %vm1433_vm8 = vcmask 277504   ;;  %vm1610_vm9 = vcmask 916480   ;;  %s1887_s26 = sshll.u32 %s185_s23, 5  ;;  %vm1784_vm10 = vcmask 130048   ;;  %s2119_s15 = smov [#allocation2]  }
  0x18   : > { %s2202_s30 = scalar_lea.vmem %s2395_s0, %s1957_s27  ;;  %s187_s27 = scalar_lea.vmem [#allocation2], %s1887_s26 }
  0x19   : > { %v2205_v1 = vld [vmem:[%s2202_s30 + $0x8] sm:$0xff]  ;;  %v2208_v2 = vld [vmem:[%s2202_s30] sm:$0xff]  ;;  %v1060_v9 = vld [vmem:[%s2202_s30 + $0x14] sm:$0xf]  ;;  %s1803_s29 = sshll.u32 %s187_s27, 4  ;;  %s1804_s29 = int_to_ptr.vmem [resolvable:$true] %s1803_s29 }
  0x1a   : > { %211 = vrot.lane.b32.xlu0 %v2205_v1, %s2110_s4  ;;  %207 = vrot.lane.b32.xlu1 %v2208_v2, %s2110_s4  ;;  %v2214_v3 = vcombine.high %v2208_v2, %v2208_v2  ;;  %v2218_v4 = vcombine.high %v2205_v1, %v2205_v1  ;;  %v704_v5 = vld [vmem:[%s2202_s30 + $0x4] sm:$0xff]  ;;  %v705_v7 = vld [vmem:[%s2202_s30 + $0xc] sm:$0xff] }
  0x1b   : > { %v710_v6 = vcombine.high %v704_v5, %v704_v5  ;;  %v711_v8 = vcombine.high %v705_v7, %v705_v7  ;;  %v1241_v10 = vld [vmem:[%s2202_s30 + $0x10] sm:$0xff] }
  0x1c   : > { %v1247_v11 = vcombine.high %v1241_v10, %v1241_v10  ;;  %v1595_v13 = vld [vmem:[%s2202_s30 + $0x14] sm:$0xff] }
  0x1d   : > { %v1601_v14 = vcombine.high %v1595_v13, %v1595_v13 }
  0x1e   : > { %539 = vrot.lane.b32.xlu1 %v2205_v1, %s2111_s5  ;;  %209 = vrot.lane.b32.xlu0 %v2214_v3, %s2110_s4 }
  0x22   : > { %213 = vrot.lane.b32.xlu1 %v2218_v4, %s2110_s4  ;;  %537 = vrot.lane.b32.xlu0 %v2214_v3, %s2111_s5 }
  0x26   : > { %541 = vrot.lane.b32.xlu1 %v2218_v4, %s2111_s5  ;;  %535 = vrot.lane.b32.xlu0 %v2208_v2, %s2111_s5  ;;  %s1801_s5 = scalar_lea.hbm %s2398_s3, %s1956_s28 }
  0x2a   : > { %716 = vrot.lane.b32.xlu1 %v705_v7, %s2112_s6  ;;  %714 = vrot.lane.b32.xlu0 %v710_v6, %s2112_s6 }
  0x2e   : > { %718 = vrot.lane.b32.xlu1 %v711_v8, %s2112_s6  ;;  %712 = vrot.lane.b32.xlu0 %v704_v5, %s2112_s6  ;;  %s1787_s6 = scalar_lea.sflag [#allocation3], %s185_s23 }
  0x32   : > { %893 = vrot.lane.b32.xlu1 %v705_v7, %s2113_s7  ;;  %891 = vrot.lane.b32.xlu0 %v710_v6, %s2113_s7 }
  0x36   : > { %895 = vrot.lane.b32.xlu1 %v711_v8, %s2113_s7  ;;  %889 = vrot.lane.b32.xlu0 %v704_v5, %s2113_s7  ;;  %s2031_s7 = scalar_lea.vmem %s1804_s29, 512 }
  0x37   : > { %p2032_p12 = scmp.ne.s32.totalorder %s1804_s29, %s2031_s7 }
  0x39   : > { %p2033_p13 = pnand %p2032_p12, %p2180_p4 }
  0x3a   : > { %1072 = vrot.lane.b32.xlu1 %v705_v7, %s2114_s8  ;;  %1070 = vrot.lane.b32.xlu0 %v710_v6, %s2114_s8 }
  0x3b   : > { %p2034_p0 = pneg %p2033_p13 }
  0x3e   : > { %1076 = vrot.lane.b32.xlu1 %v1060_v9, %s2114_s8  ;;  %1074 = vrot.lane.b32.xlu0 %v711_v8, %s2114_s8  ;;  %v1937_v9 = vld [vmem:[%s2396_s1 + $0x38] sm:$0xff] }
  0x42   : > { %1250 = vrot.lane.b32.xlu1 %v2218_v4, %s2115_s9  ;;  %1068 = vrot.lane.b32.xlu0 %v704_v5, %s2114_s8  ;;  %s2035_s8 = sshll.u32 %s2119_s15, 4  ;;  %s2036_s8 = int_to_ptr.vmem [resolvable:$false] %s2035_s8 }
  0x43   : > { %p2038_p1 = scmp.lt.s32.totalorder %s1804_s29, %s2036_s8 }
  0x46   : > { %1248 = vrot.lane.b32.xlu1 %v2205_v1, %s2115_s9  ;;  %1252 = vrot.lane.b32.xlu0 %v1241_v10, %s2115_s9 }
  0x4a   : > { %1427 = vrot.lane.b32.xlu1 %v2218_v4, %s2116_s10  ;;  %1254 = vrot.lane.b32.xlu0 %v1247_v11, %s2115_s9  ;;  %s2037_s9 = scalar_lea.vmem %s2036_s8, 1024 }
  0x4b   : > { %p2039_p2 = scmp.lt.s32.totalorder %s2037_s9, %s2031_s7 }
  0x4d   : > { %p2040_p3 = por %p2039_p2, %p2038_p1 }
  0x4e   : > { %1425 = vrot.lane.b32.xlu1 %v2205_v1, %s2116_s10  ;;  %1429 = vrot.lane.b32.xlu0 %v1241_v10, %s2116_s10 }
  0x4f   : > { %p2041_p5 = pnand %p2040_p3, %p2034_p0 }
  0x52   : > { %1604 = vrot.lane.b32.xlu1 %v711_v8, %s2118_s11  ;;  %1431 = vrot.lane.b32.xlu0 %v1247_v11, %s2116_s10 }
  0x56   : > { %1602 = vrot.lane.b32.xlu1 %v705_v7, %s2118_s11  ;;  %1606 = vrot.lane.b32.xlu0 %v1595_v13, %s2118_s11 }
  0x5a   : > { %1608 = vrot.lane.b32.xlu0 %v1601_v14, %s2118_s11  ;;  %1774 = vperm.xlu1 %2023, %v1771_v15  }
  0x8c   : > { %v212_v16 = vpop.permute.xlu0 %211  ;;  %v208_v17 = vpop.permute.xlu1 %207 }
  0x90   : > { %v540_v18 = vpop.permute.xlu1 %539  ;;  %v210_v19 = vpop.permute.xlu0 %209 }
  0x91   : > { %v217_v20 = vsel %vm215_vm0, %v210_v19, %v212_v16  ;;  %v216_v21 = vsel %vm215_vm0, %v208_v17, %v210_v19  ;;  %v1944_v17 = vld [vmem:[%s2396_s1 + $0x40] sm:$0xff] }
  0x92   : > { %1890 = vmatprep.subr.msk.mxu0 %vm223_vm1, %v217_v20 }
  0x93   : > { %1891 = vmatpush1.msk.msra.mxu0 %vm223_vm1, %v216_v21 }
  0x94   : > { %v214_v23 = vpop.permute.xlu1 %213  ;;  %1896 = vmatprep.subr.msk.mxu0 %vm223_vm1, %v2214_v3  ;;  %v538_v24 = vpop.permute.xlu0 %537  ;;  %1892 = vmatmul.mubr.msk.f32.vlgmr.msra.gmra.mxu0 %vm219_vm2, %v1889_v22 }
  0x95   : > { %v545_v25 = vsel %vm543_vm3, %v538_v24, %v540_v18  ;;  %1893 = vmatprep.subr.msk.mxu1 %vm223_vm1, %v214_v23  ;;  %1897 = vmatpush1.msk.msra.mxu0 %vm223_vm1, %v2208_v2  ;;  %v218_v26 = vsel %vm215_vm0, %v212_v16, %v214_v23 }
  0x96   : > { %1894 = vmatpush1.msk.msra.mxu1 %vm223_vm1, %v218_v26  ;;  %1903 = vmatprep.subr.msk.mxu0 %vm223_vm1, %v545_v25 }
  0x97   : > { %1895 = vmatmul.mubr.msk.f32.vlgmr.msra.gmra.mxu1 %vm219_vm2, %v1889_v22  ;;  %1899 = vmatprep.subr.msk.mxu1 %vm223_vm1, %v2218_v4 }
  0x98   : > { %v542_v28 = vpop.permute.xlu1 %541  ;;  %v536_v29 = vpop.permute.xlu0 %535  ;;  %449 = vmatprep.mubr.f32.mxu0 %v2109_v0  ;;  %1900 = vmatpush1.msk.msra.mxu1 %vm223_vm1, %v2205_v1  ;;  %v1930_v1 = vld [vmem:[%s2396_s1 + $0x30] sm:$0xff] }
  0x99   : > { %v546_v30 = vsel %vm543_vm3, %v540_v18, %v542_v28  ;;  %v544_v31 = vsel %vm543_vm3, %v536_v29, %v538_v24  ;;  %1898 = vmatmul.mubr.msk.f32.vlgmr.msra.gmra.mxu0 %vm219_vm2, %v200_v27  ;;  %520 = vmatprep.mubr.f32.mxu1 %v2109_v0 }
  0x9a   : > { %1904 = vmatpush1.msk.msra.mxu0 %vm223_vm1, %v544_v31  ;;  %1906 = vmatprep.subr.msk.mxu1 %vm223_vm1, %v542_v28 }
  0x9b   : > { %1901 = vmatmul.mubr.msk.f32.vlgmr.msra.gmra.mxu1 %vm219_vm2, %v200_v27  ;;  %622 = vmatprep.mubr.f32.mxu0 %v2109_v0 }
  0x9c   : > { %1907 = vmatpush1.msk.msra.mxu1 %vm223_vm1, %v546_v30  ;;  %v717_v33 = vpop.permute.xlu1 %716  ;;  %v715_v34 = vpop.permute.xlu0 %714  ;;  %693 = vmatprep.mubr.f32.mxu1 %v2109_v0 }
  0x9d   : > { %v722_v35 = vsel %vm720_vm4, %v715_v34, %v717_v33  ;;  %1905 = vmatmul.mubr.msk.f32.vlgmr.msra.gmra.mxu0 %vm219_vm2, %v1902_v32 }
  0x9e   : > { %1910 = vmatprep.subr.msk.mxu0 %vm223_vm1, %v722_v35  ;;  %799 = vmatprep.mubr.f32.mxu0 %v2109_v0 }
  0x9f   : > { %1908 = vmatmul.mubr.msk.f32.vlgmr.msra.gmra.mxu1 %vm219_vm2, %v1902_v32 }
  0xa0   : > { %v719_v36 = vpop.permute.xlu1 %718  ;;  %v713_v37 = vpop.permute.xlu0 %712  ;;  %870 = vmatprep.mubr.f32.mxu1 %v2109_v0 }
  0xa1   : > { %v723_v39 = vsel %vm720_vm4, %v717_v33, %v719_v36  ;;  %v721_v40 = vsel %vm720_vm4, %v713_v37, %v715_v34  ;;  %1913 = vmatprep.subr.msk.mxu1 %vm223_vm1, %v719_v36 }
  0xa2   : > { %1911 = vmatpush1.msk.msra.mxu0 %vm223_vm1, %v721_v40  ;;  %1914 = vmatpush1.msk.msra.mxu1 %vm223_vm1, %v723_v39 }
  0xa3   : > { %1912 = vmatmul.mubr.msk.f32.vlgmr.msra.gmra.mxu0 %vm219_vm2, %v1909_v38  ;;  %1915 = vmatmul.mubr.msk.f32.vlgmr.msra.gmra.mxu1 %vm219_vm2, %v1909_v38 }
  0xa4   : > { %v894_v41 = vpop.permute.xlu1 %893  ;;  %v892_v42 = vpop.permute.xlu0 %891  ;;  %1047 = vmatprep.mubr.f32.mxu1 %v2109_v0  ;;  %976 = vmatprep.mubr.f32.mxu0 %v2109_v0 }
  0xa5   : > { %v899_v43 = vsel %vm897_vm5, %v892_v42, %v894_v41 }
  0xa6   : > { %1917 = vmatprep.subr.msk.mxu0 %vm223_vm1, %v899_v43 }
  0xa8   : > { %v896_v44 = vpop.permute.xlu1 %895  ;;  %v890_v45 = vpop.permute.xlu0 %889 }
  0xa9   : > { %v900_v47 = vsel %vm897_vm5, %v894_v41, %v896_v44  ;;  %v898_v48 = vsel %vm897_vm5, %v890_v45, %v892_v42  ;;  %1920 = vmatprep.subr.msk.mxu1 %vm223_vm1, %v896_v44 }
  0xaa   : > { %1918 = vmatpush1.msk.msra.mxu0 %vm223_vm1, %v898_v48  ;;  %1921 = vmatpush1.msk.msra.mxu1 %vm223_vm1, %v900_v47 }
  0xab   : > { %1922 = vmatmul.mubr.msk.f32.vlgmr.msra.gmra.mxu1 %vm219_vm2, %v1916_v46  ;;  %1919 = vmatmul.mubr.msk.f32.vlgmr.msra.gmra.mxu0 %vm219_vm2, %v1916_v46 }
  0xac   : > { %v1073_v49 = vpop.permute.xlu1 %1072  ;;  %v1071_v50 = vpop.permute.xlu0 %1070  ;;  %1158 = vmatprep.mubr.f32.mxu0 %v2109_v0  ;;  %1229 = vmatprep.mubr.f32.mxu1 %v2109_v0 }
  0xad   : > { %v1080_v51 = vsel %vm1078_vm6, %v1071_v50, %v1073_v49 }
  0xae   : > { %1924 = vmatprep.subr.msk.mxu0 %vm223_vm1, %v1080_v51 }
  0xb0   : > { %v1077_v52 = vpop.permute.xlu1 %1076  ;;  %v1075_v53 = vpop.permute.xlu0 %1074 }
  0xb1   : > { %v1081_v54 = vsel %vm1078_vm6, %v1073_v49, %v1075_v53  ;;  %v1082_v55 = vsel %vm1078_vm6, %v1075_v53, %v1077_v52 }
  0xb2   : > { %1927 = vmatprep.subr.msk.mxu1 %vm223_vm1, %v1082_v55 }
  0xb3   : > { %1928 = vmatpush1.msk.msra.mxu1 %vm223_vm1, %v1081_v54 }
  0xb4   : > { %v1251_v57 = vpop.permute.xlu1 %1250  ;;  %v1069_v58 = vpop.permute.xlu0 %1068  ;;  %1929 = vmatmul.mubr.msk.f32.vlgmr.msra.gmra.mxu1 %vm219_vm2, %v1923_v56 }
  0xb5   : > { %v1079_v59 = vsel %vm1078_vm6, %v1069_v58, %v1071_v50  ;;  %1406 = vmatprep.mubr.f32.mxu1 %v2109_v0 }
  0xb6   : > { %1925 = vmatpush1.msk.msra.mxu0 %vm223_vm1, %v1079_v59 }
  0xb7   : > { %1926 = vmatmul.mubr.msk.f32.vlgmr.msra.gmra.mxu0 %vm219_vm2, %v1923_v56 }
  0xb8   : > { %v1249_v60 = vpop.permute.xlu1 %1248  ;;  %v1253_v61 = vpop.permute.xlu0 %1252  ;;  %1335 = vmatprep.mubr.f32.mxu0 %v2109_v0 }
  0xb9   : > { %v1257_v62 = vsel %vm1256_vm7, %v1249_v60, %v1251_v57  ;;  %v1258_v63 = vsel %vm1256_vm7, %v1251_v57, %v1253_v61 }
  0xba   : > { %1931 = vmatprep.subr.msk.mxu0 %vm223_vm1, %v1258_v63 }
  0xbb   : > { %1932 = vmatpush1.msk.msra.mxu0 %vm223_vm1, %v1257_v62 }
  0xbc   : > { %v1428_v2 = vpop.permute.xlu1 %1427  ;;  %1933 = vmatmul.mubr.msk.f32.vlgmr.msra.gmra.mxu0 %vm219_vm2, %v1930_v1  ;;  %v1255_v3 = vpop.permute.xlu0 %1254 }
  0xbd   : > { %v1259_v4 = vsel %vm1256_vm7, %v1253_v61, %v1255_v3  ;;  %1934 = vmatprep.subr.msk.mxu1 %vm223_vm1, %v1255_v3  ;;  %1512 = vmatprep.mubr.f32.mxu0 %v2109_v0 }
  0xbe   : > { %1935 = vmatpush1.msk.msra.mxu1 %vm223_vm1, %v1259_v4 }
  0xbf   : > { %1936 = vmatmul.mubr.msk.f32.vlgmr.msra.gmra.mxu1 %vm219_vm2, %v1930_v1 }
  0xc0   : > { %v1426_v5 = vpop.permute.xlu1 %1425  ;;  %v1430_v6 = vpop.permute.xlu0 %1429  ;;  %1583 = vmatprep.mubr.f32.mxu1 %v2109_v0 }
  0xc1   : > { %v1434_v7 = vsel %vm1433_vm8, %v1426_v5, %v1428_v2  ;;  %v1435_v8 = vsel %vm1433_vm8, %v1428_v2, %v1430_v6 }
  0xc2   : > { %1938 = vmatprep.subr.msk.mxu0 %vm223_vm1, %v1435_v8 }
  0xc3   : > { %1939 = vmatpush1.msk.msra.mxu0 %vm223_vm1, %v1434_v7 }
  0xc4   : > { %v1605_v10 = vpop.permute.xlu1 %1604  ;;  %1940 = vmatmul.mubr.msk.f32.vlgmr.msra.gmra.mxu0 %vm219_vm2, %v1937_v9  ;;  %v1432_v11 = vpop.permute.xlu0 %1431 }
  0xc5   : > { %v1436_v12 = vsel %vm1433_vm8, %v1430_v6, %v1432_v11  ;;  %1941 = vmatprep.subr.msk.mxu1 %vm223_vm1, %v1432_v11  ;;  %1689 = vmatprep.mubr.f32.mxu0 %v2109_v0 }
  0xc6   : > { %1942 = vmatpush1.msk.msra.mxu1 %vm223_vm1, %v1436_v12 }
  0xc7   : > { %1943 = vmatmul.mubr.msk.f32.vlgmr.msra.gmra.mxu1 %vm219_vm2, %v1937_v9 }
  0xc8   : > { %v1603_v13 = vpop.permute.xlu1 %1602  ;;  %v1607_v14 = vpop.permute.xlu0 %1606  ;;  %1760 = vmatprep.mubr.f32.mxu1 %v2109_v0 }
  0xc9   : > { %v1611_v15 = vsel %vm1610_vm9, %v1603_v13, %v1605_v10  ;;  %v1612_v16 = vsel %vm1610_vm9, %v1605_v10, %v1607_v14 }
  0xca   : > { %1945 = vmatprep.subr.msk.mxu0 %vm223_vm1, %v1612_v16 }
  0xcb   : > { %1946 = vmatpush1.msk.msra.mxu0 %vm223_vm1, %v1611_v15 }
  0xcc   : > { %1947 = vmatmul.mubr.msk.f32.vlgmr.msra.gmra.mxu0 %vm219_vm2, %v1944_v17  ;;  %v1609_v18 = vpop.permute.xlu0 %1608 }
  0xcd   : > { %v1613_v19 = vsel %vm1610_vm9, %v1607_v14, %v1609_v18  ;;  %1948 = vmatprep.subr.msk.mxu1 %vm223_vm1, %v1609_v18 }
  0xce   : > { %1949 = vmatpush1.msk.msra.mxu1 %vm223_vm1, %v1613_v19 }
  0xcf   : > { %1950 = vmatmul.mubr.msk.f32.vlgmr.msra.gmra.mxu1 %vm219_vm2, %v1944_v17 }
  0xd5   : > { %v1775_v12 = vpop.permute.xlu1 %1774 }
 0x154   : > { %v298_v0 = vpop.f32.mrf.mxu0 }
 0x156   : > { %v300_v20 = vpop.f32.mrf.mxu0 }
 0x157   : > { %v369_v21 = vpop.f32.mrf.mxu1 }
 0x159   : > { %v371_v22 = vpop.f32.mrf.mxu1  ;;  %v451_v23 = vpop.f32.mrf.mxu0 }
 0x15a   : > { %v452_v38 = vadd.f32 %v451_v23, %v298_v0 }
 0x15b   : > { %v453_v24 = vpop.f32.mrf.mxu0  ;;  %v522_v25 = vpop.f32.mrf.mxu1 }
 0x15c   : > { %v523_v41 = vadd.f32 %v522_v25, %v369_v21  ;;  %v454_v42 = vadd.f32 %v453_v24, %v300_v20 }
 0x15d   : > { %v624_v26 = vpop.f32.mrf.mxu0  ;;  %v524_v27 = vpop.f32.mrf.mxu1 }
 0x15e   : > { %v700_v43 = vadd.f32 %v624_v26, %v452_v38  ;;  %v525_v44 = vadd.f32 %v524_v27, %v371_v22 }
 0x15f   : > { %v626_v28 = vpop.f32.mrf.mxu0  ;;  %v695_v29 = vpop.f32.mrf.mxu1 }
 0x160   : > { %v702_v47 = vadd.f32 %v695_v29, %v523_v41  ;;  %v701_v48 = vadd.f32 %v626_v28, %v454_v42 }
 0x161   : > { %v697_v31 = vpop.f32.mrf.mxu1 }
 0x162   : > { %v703_v50 = vadd.f32 %v697_v31, %v525_v44 }
 0x163   : > { %v801_v30 = vpop.f32.mrf.mxu0  ;;  %v872_v33 = vpop.f32.mrf.mxu1 }
 0x164   : > { %v877_v49 = vadd.f32 %v801_v30, %v700_v43  ;;  %v879_v53 = vadd.f32 %v872_v33, %v702_v47 }
 0x165   : > { %v803_v32 = vpop.f32.mrf.mxu0  ;;  %v874_v35 = vpop.f32.mrf.mxu1 }
 0x166   : > { %v878_v54 = vadd.f32 %v803_v32, %v701_v48  ;;  %v880_v57 = vadd.f32 %v874_v35, %v703_v50 }
 0x16b   : > { %v978_v34 = vpop.f32.mrf.mxu0  ;;  %v1049_v37 = vpop.f32.mrf.mxu1 }
 0x16c   : > { %v1054_v55 = vadd.f32 %v978_v34, %v877_v49  ;;  %v1056_v59 = vadd.f32 %v1049_v37, %v879_v53 }
 0x16d   : > { %v980_v36 = vpop.f32.mrf.mxu0  ;;  %v1051_v40 = vpop.f32.mrf.mxu1 }
 0x16e   : > { %v1055_v61 = vadd.f32 %v980_v36, %v878_v54  ;;  %v1057_v1 = vadd.f32 %v1051_v40, %v880_v57 }
 0x174   : > { %v1231_v46 = vpop.f32.mrf.mxu1 }
 0x175   : > { %v1238_v5 = vadd.f32 %v1231_v46, %v1056_v59 }
 0x176   : > { %v1233_v52 = vpop.f32.mrf.mxu1 }
 0x177   : > { %v1160_v39 = vpop.f32.mrf.mxu0  ;;  %v1239_v9 = vadd.f32 %v1233_v52, %v1057_v1 }
 0x178   : > { %v1236_v62 = vadd.f32 %v1160_v39, %v1054_v55 }
 0x179   : > { %v1162_v45 = vpop.f32.mrf.mxu0 }
 0x17a   : > { %v1237_v2 = vadd.f32 %v1162_v45, %v1055_v61 }
 0x17c   : > { %v1337_v51 = vpop.f32.mrf.mxu0 }
 0x17d   : > { %v1413_v3 = vadd.f32 %v1337_v51, %v1236_v62 }
 0x17e   : > { %v1339_v58 = vpop.f32.mrf.mxu0 }
 0x17f   : > { %v1408_v56 = vpop.f32.mrf.mxu1  ;;  %v1414_v7 = vadd.f32 %v1339_v58, %v1237_v2 }
 0x180   : > { %v1415_v10 = vadd.f32 %v1408_v56, %v1238_v5 }
 0x181   : > { %v1410_v63 = vpop.f32.mrf.mxu1 }
 0x182   : > { %v1416_v16 = vadd.f32 %v1410_v63, %v1239_v9 }
 0x184   : > { %v1514_v60 = vpop.f32.mrf.mxu0 }
 0x185   : > { %v1590_v8 = vadd.f32 %v1514_v60, %v1413_v3 }
 0x186   : > { %v1516_v6 = vpop.f32.mrf.mxu0 }
 0x187   : > { %v1585_v4 = vpop.f32.mrf.mxu1  ;;  %v1591_v13 = vadd.f32 %v1516_v6, %v1414_v7 }
 0x188   : > { %v1592_v17 = vadd.f32 %v1585_v4, %v1415_v10 }
 0x189   : > { %v1587_v14 = vpop.f32.mrf.mxu1 }
 0x18a   : > { %v1593_v21 = vadd.f32 %v1587_v14, %v1416_v16 }
 0x18c   : > { %v1691_v11 = vpop.f32.mrf.mxu0 }
 0x18d   : > { %v1767_v15 = vadd.f32 %v1691_v11, %v1590_v8 }
 0x18e   : > { %v1693_v18 = vpop.f32.mrf.mxu0 }
 0x18f   : > { %v1777_v19 = vadd.f32 %v1775_v12, %v1767_v15  ;;  %v1768_v0 = vadd.f32 %v1693_v18, %v1591_v13  ;;  %v1762_v20 = vpop.f32.mrf.mxu1 }
 0x190   : > { %v1769_v22 = vadd.f32 %v1762_v20, %v1592_v17 }
 0x191   : > { %1781 = vst [vmem:[%s187_s27] sm:$0xff] %v1777_v19  ;;  %v1778_v23 = vadd.f32 %v1775_v12, %v1768_v0  ;;  %v1764_v24 = vpop.f32.mrf.mxu1 }
 0x192   : > { %v1779_v25 = vadd.f32 %v1775_v12, %v1769_v22  ;;  %v1770_v26 = vadd.f32 %v1764_v24, %v1593_v21 }
 0x193   : > { %1782 = vst [vmem:[%s187_s27 + $0x8] sm:$0xff] %v1778_v23 }
 0x194   : > { %1783 = vst [vmem:[%s187_s27 + $0x10] sm:$0xff] %v1779_v25  ;;  %v1780_v27 = vadd.f32 %v1775_v12, %v1770_v26 }
 0x196   : > { %1785 = vst.msk [vmem:[%s187_s27 + $0x18] sm:$0xff] %vm1784_vm10, %v1780_v27 }
 0x197   : > { %2044 = shalt.err (!%p2041_p5)
}
 0x198   : > { %s2045_s10 = scalar_lea.hbm %s1801_s5, 512  ;;  %s2049_s19 = scalar_lea.hbm %s2398_s3, 1024 }
 0x199   : > { %p2046_p6 = scmp.ne.s32.totalorder %s1801_s5, %s2045_s10  ;;  %p2050_p10 = scmp.lt.s32.totalorder %s1801_s5, %s2398_s3 }
 0x19a   : > { %p2051_p11 = scmp.lt.s32.totalorder %s2049_s19, %s2045_s10 }
 0x19b   : > { %p2047_p7 = pnand %p2046_p6, %p2180_p4 }
 0x19c   : > { %p2052_p12 = por %p2051_p11, %p2050_p10 }
 0x19d   : > { %p2048_p9 = pneg %p2047_p7 }
 0x19f   : > { %p2053_p13 = pnand %p2052_p12, %p2048_p9 }
 0x1a1   : > { %2056 = shalt.err (!%p2053_p13)
}
 0x1a2   : > { %1958 = dma.vmem_to_hbm [thread:$0]  (%p2180_p4), %s1804_s29, 512, %s1801_s5, %s1787_s6  }
 0x1a3 PF: > { %p1964_p0 = scmp.ge.s32.totalorder %s2107_s17, 2  ;;  %s1815_s26 = sand.u32 1, %s2087_s12  }
 0x1a4   : > { %s1816_s27 = scalar_lea.sflag [#allocation3], %s1815_s26 }
 0x1a5   : > { %p1961_p1 = pnand %p1964_p0, %p2187_p8 }
 0x1a7   : > { %p1962_p2 = pneg %p1961_p1 }
 0x1a9   : > { %2082 = dma.done.wait (%p1962_p2), %s1816_s27, 512  }
 0x1aa   : > { %2084 = vsyncadd (%p1962_p2), %s1816_s27, 4294966784  ;;  %s16_s17 = sadd.s32 1, %s2107_s17   ;;  %s2401_s12 = smov %s2091_s13 }
 0x1ab   : > { %p13_p3 = scmp.ge.s32.totalorder %s16_s17, 4   ;;  %s2402_s13 = smov %s2095_s14 }
 0x1ac   : > { %s2403_s14 = smov %s2193_s25  ;;  %s2404_s15 = smov %s2103_s16 }
 0x1ad   : > { %s2405_s16 = smov %s2407_s20  ;;  %15 = sbr.rel (!%p13_p3) target bundleno = 4 (0x4), region = 75 }
 0x1b2   :  { %1821 = vsyncpa [#allocation3], 1 }
 0x1b3   :  { %1823 = vsyncpa [#allocation3 + $0x1], 1 }

</bundles_post_ra>
